<compile_context>
chip_gen: v5e
topology: v5e:2x2
jax: 0.10.0
libtpu: 0.0.40
codegen_flags: <defaults>
</compile_context>

<pallas_src>
import functools

import jax
import jax.numpy as jnp
from jax.experimental import pallas as pl
from jax.experimental.pallas import tpu as pltpu

IN_DIM = 28 * 28     # 784
HID_DIM = 128
OUT_DIM = 10
OUT_PAD = 128        # lane-dense padded output width (zeros in cols 10..127)
_B_ALIGN = 8         # sublane alignment for the batch tile


def _round_up(x, m):
    return ((x + m - 1) // m) * m


def _simplenet_kernel(x_ref, w1_ref, b1_ref, w2_ref, b2_ref, o_ref):
    # x_ref : (tb, 784)  bf16      w1_ref: (784, 128) bf16   b1_ref: (1, 128) f32
    # w2_ref: (128, 128) bf16      b2_ref: (1, 128)  f32     o_ref : (tb, 128) f32
    x = x_ref[...]
    # Layer 1 on the MXU, accumulate in f32; bias add + ReLU on the VPU in f32.
    h = jnp.dot(x, w1_ref[...], preferred_element_type=jnp.float32)
    h = jnp.maximum(h + b1_ref[...], 0.0)
    # Layer 2: feed the MXU bf16 activations, accumulate f32, lane-dense store.
    h = h.astype(w2_ref.dtype)
    out = jnp.dot(h, w2_ref[...], preferred_element_type=jnp.float32) + b2_ref[...]
    o_ref[...] = out.astype(o_ref.dtype)


@functools.partial(jax.jit, static_argnames=("tile_b",))
def simplenet_forward(x, w1_t, b1, w2_t, b2, *, tile_b=512):
    """Forward pass of SimpleNet.

    x:    any shape whose trailing elements flatten to (B, 784) (e.g. (B,1,28,28))
    w1_t: (784, 128), b1: (128,), w2_t: (128, 10), b2: (10,)
    Returns logits of shape (B, 10), float32.
    """
    x2d = x.reshape(-1, IN_DIM)
    B = x2d.shape[0]

    # Effective batch tile: never bigger than the (8-aligned) batch, and when the
    # batch is large prefer >= 2 grid steps so the "parallel" axis can shard
    # across v7x's 2 TensorCores.
    tile_eff = min(tile_b, _round_up(B, _B_ALIGN))
    tile_eff = max(tile_eff, _B_ALIGN)
    if B >= 2 * _B_ALIGN and _round_up(B, tile_eff) // tile_eff < 2:
        tile_eff = _round_up(pl.cdiv(B, 2), _B_ALIGN)
    B_pad = _round_up(B, tile_eff)

    # Ragged batch: zero-pad rows (pure throwaway compute in the last tile).
    if B_pad != B:
        x2d = jnp.pad(x2d, ((0, B_pad - B), (0, 0)))

    # Stream x and hold weights in bf16; biases stay f32 for the f32 epilogues.
    x_bf = x2d.astype(jnp.bfloat16)
    w1_bf = w1_t.astype(jnp.bfloat16)                        # (784, 128)
    b1_2d = b1.reshape(1, HID_DIM).astype(jnp.float32)       # (1, 128)
    # Lane-pad the second layer to 128 output columns (zeros beyond col 9).
    w2_pad = jnp.zeros((HID_DIM, OUT_PAD), jnp.bfloat16).at[:, :OUT_DIM].set(
        w2_t.astype(jnp.bfloat16))
    b2_pad = jnp.zeros((1, OUT_PAD), jnp.float32).at[0, :OUT_DIM].set(
        b2.astype(jnp.float32))

    grid = (B_pad // tile_eff,)

    out_full = pl.pallas_call(
        _simplenet_kernel,
        out_shape=jax.ShapeDtypeStruct((B_pad, OUT_PAD), jnp.float32),
        grid_spec=pltpu.PrefetchScalarGridSpec(
            num_scalar_prefetch=0,
            grid=grid,
            in_specs=[
                pl.BlockSpec((tile_eff, IN_DIM), lambda i: (i, 0)),   # x: streamed
                pl.BlockSpec((IN_DIM, HID_DIM), lambda i: (0, 0)),    # W1^T: resident
                pl.BlockSpec((1, HID_DIM), lambda i: (0, 0)),         # b1: resident
                pl.BlockSpec((HID_DIM, OUT_PAD), lambda i: (0, 0)),   # W2^T padded
                pl.BlockSpec((1, OUT_PAD), lambda i: (0, 0)),         # b2 padded
            ],
            out_specs=pl.BlockSpec((tile_eff, OUT_PAD), lambda i: (i, 0)),
        ),
        compiler_params=pltpu.CompilerParams(
            dimension_semantics=("parallel",),
        ),
    )(x_bf, w1_bf, b1_2d, w2_pad, b2_pad)

    # Strip the batch padding and the 118 zero lanes.
    return out_full[:B, :OUT_DIM]


def init_params(key):
    """Deterministic init mimicking nn.Linear default (uniform +/- 1/sqrt(fan_in)).

    Stored already transposed relative to PyTorch's (out, in) convention."""
    k1, k2, k3, k4 = jax.random.split(key, 4)
    bound1 = 1.0 / jnp.sqrt(jnp.float32(IN_DIM))
    bound2 = 1.0 / jnp.sqrt(jnp.float32(HID_DIM))
    w1_t = jax.random.uniform(k1, (IN_DIM, HID_DIM), jnp.float32, -bound1, bound1)
    b1 = jax.random.uniform(k2, (HID_DIM,), jnp.float32, -bound1, bound1)
    w2_t = jax.random.uniform(k3, (HID_DIM, OUT_DIM), jnp.float32, -bound2, bound2)
    b2 = jax.random.uniform(k4, (OUT_DIM,), jnp.float32, -bound2, bound2)
    return w1_t, b1, w2_t, b2


if __name__ == "__main__":
    key = jax.random.PRNGKey(0)
    kp, kx = jax.random.split(key)
    w1_t, b1, w2_t, b2 = init_params(kp)

    # Small MNIST-like batch: (8, 1, 28, 28). The wrapper clamps the tile to the
    # batch, so the large default tile_b still works at this small test shape.
    x = jax.random.normal(kx, (8, 1, 28, 28), jnp.float32)

    out = simplenet_forward(x, w1_t, b1, w2_t, b2)
    out = jax.block_until_ready(out)

    # Pure-JAX f32 reference. Kernel computes matmuls with bf16 inputs (f32 accum),
    # so use a bf16-appropriate tolerance.
    x2d = x.reshape(-1, IN_DIM)
    ref = jnp.maximum(x2d @ w1_t + b1, 0.0) @ w2_t + b2
    assert out.shape == (8, OUT_DIM), out.shape
    assert jnp.allclose(out, ref, atol=5e-2, rtol=5e-2), "mismatch vs reference"

    print("KERNEL_OK")
</pallas_src>

<mosaic_0001>
module attributes {stable_mosaic.version = 11 : i64} {
  func.func @_simplenet_kernel(%arg0: i32, %arg1: memref<8x784xbf16, #tpu.memory_space<vmem>>, %arg2: memref<784x128xbf16, #tpu.memory_space<vmem>>, %arg3: memref<1x128xf32, #tpu.memory_space<vmem>>, %arg4: memref<128x128xbf16, #tpu.memory_space<vmem>>, %arg5: memref<1x128xf32, #tpu.memory_space<vmem>>, %arg6: memref<8x128xf32, #tpu.memory_space<vmem>>) attributes {dimension_semantics = [#tpu.dimension_semantics<parallel>], iteration_bounds = array<i64: 1>, scalar_prefetch = 0 : i64, scratch_operands = 0 : i64, tpu.core_type = #tpu.core_type<tc>, window_params = [{transform_indices = @transform_0, window_bounds = array<i64: 8, 784>}, {pipeline_mode = #tpu.pipeline_mode<synchronous>, transform_indices = @transform_1, window_bounds = array<i64: 784, 128>}, {pipeline_mode = #tpu.pipeline_mode<synchronous>, transform_indices = @transform_2, window_bounds = array<i64: 1, 128>}, {pipeline_mode = #tpu.pipeline_mode<synchronous>, transform_indices = @transform_3, window_bounds = array<i64: 128, 128>}, {pipeline_mode = #tpu.pipeline_mode<synchronous>, transform_indices = @transform_4, window_bounds = array<i64: 1, 128>}, {transform_indices = @transform_5, window_bounds = array<i64: 8, 128>}]} {
    %c0 = arith.constant 0 : index
    %c0_0 = arith.constant 0 : index
    %0 = vector.load %arg1[%c0, %c0_0] : memref<8x784xbf16, #tpu.memory_space<vmem>>, vector<8x784xbf16>
    %c0_1 = arith.constant 0 : index
    %c0_2 = arith.constant 0 : index
    %1 = vector.load %arg2[%c0_1, %c0_2] : memref<784x128xbf16, #tpu.memory_space<vmem>>, vector<784x128xbf16>
    %cst = arith.constant dense<0.000000e+00> : vector<8x128xf32>
    %2 = tpu.matmul %0, %1, %cst {dimension_numbers = #tpu.dot_dimension_numbers<[1], [0], [0], [1], [0, 0, 1, 1], [], []>} : vector<8x784xbf16>, vector<784x128xbf16>, vector<8x128xf32> -> vector<8x128xf32>
    %c0_3 = arith.constant 0 : index
    %c0_4 = arith.constant 0 : index
    %3 = vector.load %arg3[%c0_3, %c0_4] : memref<1x128xf32, #tpu.memory_space<vmem>>, vector<1x128xf32>
    %4 = vector.broadcast %3 : vector<1x128xf32> to vector<8x128xf32>
    %5 = arith.addf %2, %4 : vector<8x128xf32>
    %cst_5 = arith.constant 0.000000e+00 : f32
    %6 = vector.broadcast %cst_5 : f32 to vector<8x128xf32>
    %7 = arith.maximumf %5, %6 : vector<8x128xf32>
    %8 = arith.truncf %7 : vector<8x128xf32> to vector<8x128xbf16>
    %c0_6 = arith.constant 0 : index
    %c0_7 = arith.constant 0 : index
    %9 = vector.load %arg4[%c0_6, %c0_7] : memref<128x128xbf16, #tpu.memory_space<vmem>>, vector<128x128xbf16>
    %cst_8 = arith.constant dense<0.000000e+00> : vector<8x128xf32>
    %10 = tpu.matmul %8, %9, %cst_8 {dimension_numbers = #tpu.dot_dimension_numbers<[1], [0], [0], [1], [0, 0, 1, 1], [], []>} : vector<8x128xbf16>, vector<128x128xbf16>, vector<8x128xf32> -> vector<8x128xf32>
    %c0_9 = arith.constant 0 : index
    %c0_10 = arith.constant 0 : index
    %11 = vector.load %arg5[%c0_9, %c0_10] : memref<1x128xf32, #tpu.memory_space<vmem>>, vector<1x128xf32>
    %12 = vector.broadcast %11 : vector<1x128xf32> to vector<8x128xf32>
    %13 = arith.addf %10, %12 : vector<8x128xf32>
    %c0_11 = arith.constant 0 : index
    %c0_12 = arith.constant 0 : index
    %14 = vector.load %arg6[%c0_11, %c0_12] : memref<8x128xf32, #tpu.memory_space<vmem>>, vector<8x128xf32>
    tpu.vector_store %arg6[%c0_11, %c0_12], %13 {strides = array<i32>} : memref<8x128xf32, #tpu.memory_space<vmem>>, vector<8x128xf32>,
    return
  }
  func.func @transform_0(%arg0: i32) -> (i32, i32) {
    %c0_i32 = arith.constant 0 : i32
    %c0_i32_0 = arith.constant 0 : i32
    return %arg0, %c0_i32 : i32, i32
  }
  func.func @transform_1(%arg0: i32) -> (i32, i32) {
    %c0_i32 = arith.constant 0 : i32
    %c0_i32_0 = arith.constant 0 : i32
    %c0_i32_1 = arith.constant 0 : i32
    return %c0_i32, %c0_i32_0 : i32, i32
  }
  func.func @transform_2(%arg0: i32) -> (i32, i32) {
    %c0_i32 = arith.constant 0 : i32
    %c0_i32_0 = arith.constant 0 : i32
    %c0_i32_1 = arith.constant 0 : i32
    return %c0_i32, %c0_i32_0 : i32, i32
  }
  func.func @transform_3(%arg0: i32) -> (i32, i32) {
    %c0_i32 = arith.constant 0 : i32
    %c0_i32_0 = arith.constant 0 : i32
    %c0_i32_1 = arith.constant 0 : i32
    return %c0_i32, %c0_i32_0 : i32, i32
  }
  func.func @transform_4(%arg0: i32) -> (i32, i32) {
    %c0_i32 = arith.constant 0 : i32
    %c0_i32_0 = arith.constant 0 : i32
    %c0_i32_1 = arith.constant 0 : i32
    return %c0_i32, %c0_i32_0 : i32, i32
  }
  func.func @transform_5(%arg0: i32) -> (i32, i32) {
    %c0_i32 = arith.constant 0 : i32
    %c0_i32_0 = arith.constant 0 : i32
    return %arg0, %c0_i32 : i32, i32
  }
}

</mosaic_0001>

<bundles_post_ra>
// kernel: simplenet_forward.1
= control target key start
LH: loop header
LB: loop body
LE: loop exit
PB: predicated region body
PF: predicated region fallthrough
CT: control target
= control target key end

     0   :  { %s1179_s0 = inlined_call_operand.vmem [shape: bf16[8,784], index: 0, kind: input, shape index: {}]   ;;  %s1180_s1 = inlined_call_operand.vmem [shape: bf16[784,128], index: 1, kind: input, shape index: {}]   ;;  %s1181_s2 = inlined_call_operand.vmem [shape: f32[1,128], index: 2, kind: input, shape index: {}]   ;;  %s1182_s3 = inlined_call_operand.vmem [shape: bf16[128,128], index: 3, kind: input, shape index: {}]   ;;  %s1183_s4 = inlined_call_operand.vmem [shape: f32[1,128], index: 4, kind: input, shape index: {}]   ;;  %s1184_s5 = inlined_call_operand.hbm [shape: f32[8,128], index: 5, kind: output, shape index: {}]  }
   0x1   :  { %v877_v0 = vld [vmem:[%s1180_s1 + $0x38] sm:$0xff]  ;;  %v876_v3 = vld [vmem:[%s1180_s1 + $0x30] sm:$0xff]  ;;  %v875_v8 = vld [vmem:[%s1180_s1 + $0x28] sm:$0xff] }
   0x2   :  { %v885_v1 = vld [vmem:[%s1180_s1 + $0x78] sm:$0xff]  ;;  %450 = vmatpush.bf16.msra.mxu0 %v877_v0  ;;  %v884_v4 = vld [vmem:[%s1180_s1 + $0x70] sm:$0xff]  ;;  %v883_v9 = vld [vmem:[%s1180_s1 + $0x68] sm:$0xff] }
   0x3   :  { %v893_v2 = vld [vmem:[%s1180_s1 + $0xb8] sm:$0xff]  ;;  %463 = vmatpush.bf16.msra.mxu1 %v885_v1  ;;  %v892_v5 = vld [vmem:[%s1180_s1 + $0xb0] sm:$0xff]  ;;  %v891_v10 = vld [vmem:[%s1180_s1 + $0xa8] sm:$0xff] }
   0x4   :  { %476 = vmatpush.bf16.msra.mxu2 %v893_v2  ;;  %v901_v6 = vld [vmem:[%s1180_s1 + $0xf8] sm:$0xff]  ;;  %v900_v7 = vld [vmem:[%s1180_s1 + $0xf0] sm:$0xff]  ;;  %v899_v11 = vld [vmem:[%s1180_s1 + $0xe8] sm:$0xff] }
   0x5   :  { %489 = vmatpush.bf16.msra.mxu3 %v901_v6  ;;  %v874_v12 = vld [vmem:[%s1180_s1 + $0x20] sm:$0xff]  ;;  %v873_v16 = vld [vmem:[%s1180_s1 + $0x18] sm:$0xff] }
   0x6   :  { %451 = vmatpush.bf16.msra.mxu0 %v876_v3  ;;  %v882_v13 = vld [vmem:[%s1180_s1 + $0x60] sm:$0xff]  ;;  %v881_v17 = vld [vmem:[%s1180_s1 + $0x58] sm:$0xff] }
   0x7   :  { %464 = vmatpush.bf16.msra.mxu1 %v884_v4  ;;  %v890_v14 = vld [vmem:[%s1180_s1 + $0xa0] sm:$0xff]  ;;  %v889_v18 = vld [vmem:[%s1180_s1 + $0x98] sm:$0xff] }
   0x8   :  { %477 = vmatpush.bf16.msra.mxu2 %v892_v5  ;;  %v898_v15 = vld [vmem:[%s1180_s1 + $0xe0] sm:$0xff] }
   0x9   :  { %490 = vmatpush.bf16.msra.mxu3 %v900_v7 }
   0xa   :  { %452 = vmatpush.bf16.msra.mxu0 %v875_v8 }
   0xb   :  { %465 = vmatpush.bf16.msra.mxu1 %v883_v9 }
   0xc   :  { %478 = vmatpush.bf16.msra.mxu2 %v891_v10 }
   0xd   :  { %491 = vmatpush.bf16.msra.mxu3 %v899_v11 }
   0xe   :  { %453 = vmatpush.bf16.msra.mxu0 %v874_v12 }
   0xf   :  { %466 = vmatpush.bf16.msra.mxu1 %v882_v13 }
  0x10   :  { %479 = vmatpush.bf16.msra.mxu2 %v890_v14 }
  0x11   :  { %10 = vsyncpa [#allocation3], 0  ;;  %492 = vmatpush.bf16.msra.mxu3 %v898_v15  ;;  %v897_v19 = vld [vmem:[%s1180_s1 + $0xd8] sm:$0xff]  ;;  %v872_v20 = vld [vmem:[%s1180_s1 + $0x10] sm:$0xff]  ;;  %vm446_vm0 = vcmask 130048   ;;  %s956_s15 = smov [#allocation2]  }
  0x12   :  { %454 = vmatpush.bf16.msra.mxu0 %v873_v16  ;;  %v880_v21 = vld [vmem:[%s1180_s1 + $0x50] sm:$0xff]  ;;  %v871_v24 = vld [vmem:[%s1180_s1 + $0x8] sm:$0xff]  ;;  %v22_v26 = vld [vmem:[%s1179_s0] sm:$0xff]  ;;  %s630_s16 = sshll.u32 %s956_s15, 4  ;;  %s632_s19 = sshll.u32 %s1184_s5, 4  ;;  %s631_s16 = int_to_ptr.vmem [resolvable:$true] %s630_s16  ;;  %s633_s19 = int_to_ptr.hbm [resolvable:$true] %s632_s19 }
  0x13   :  { %467 = vmatpush.bf16.msra.mxu1 %v881_v17  ;;  %v888_v22 = vld [vmem:[%s1180_s1 + $0x90] sm:$0xff]  ;;  %v879_v25 = vld [vmem:[%s1180_s1 + $0x48] sm:$0xff]  ;;  %v132_v29 = vunpack.c.l.b16 %v22_v26  ;;  %v133_v31 = vunpack.c.h.b16 %v22_v26  ;;  %v870_v32 = vld [vmem:[%s1180_s1] sm:$0xff] }
  0x14   :  { %480 = vmatpush.bf16.msra.mxu2 %v889_v18  ;;  %v896_v23 = vld [vmem:[%s1180_s1 + $0xd0] sm:$0xff]  ;;  %v887_v27 = vld [vmem:[%s1180_s1 + $0x88] sm:$0xff]  ;;  %v878_v33 = vld [vmem:[%s1180_s1 + $0x40] sm:$0xff] }
  0x15   :  { %493 = vmatpush.bf16.msra.mxu3 %v897_v19  ;;  %v23_v28 = vld [vmem:[%s1179_s0 + $0x8] sm:$0xff]  ;;  %v909_v34 = vld [vmem:[%s1180_s1 + $0x138] sm:$0xff]  ;;  %v886_v36 = vld [vmem:[%s1180_s1 + $0x80] sm:$0xff]  ;;  %v139_v38 = vpack.c.b16 %v132_v29, %v132_v29  ;;  %v140_v39 = vpack.c.b16 %v133_v31, %v133_v31 }
  0x16   :  { %455 = vmatpush.bf16.msra.mxu0 %v872_v20  ;;  %v895_v30 = vld [vmem:[%s1180_s1 + $0xc8] sm:$0xff]  ;;  %v917_v35 = vld [vmem:[%s1180_s1 + $0x178] sm:$0xff]  ;;  %v134_v37 = vunpack.c.l.b16 %v23_v28  ;;  %v135_v40 = vunpack.c.h.b16 %v23_v28  ;;  %v894_v41 = vld [vmem:[%s1180_s1 + $0xc0] sm:$0xff] }
  0x17   :  { %468 = vmatpush.bf16.msra.mxu1 %v880_v21  ;;  %v918_v42 = vld [vmem:[%s1180_s1 + $0x180] sm:$0xff]  ;;  %v908_v43 = vld [vmem:[%s1180_s1 + $0x130] sm:$0xff]  ;;  %v907_v47 = vld [vmem:[%s1180_s1 + $0x128] sm:$0xff] }
  0x18   :  { %481 = vmatpush.bf16.msra.mxu2 %v888_v22  ;;  %v916_v44 = vld [vmem:[%s1180_s1 + $0x170] sm:$0xff]  ;;  %v141_v45 = vpack.c.b16 %v134_v37, %v134_v37  ;;  %v142_v46 = vpack.c.b16 %v135_v40, %v135_v40  ;;  %v915_v48 = vld [vmem:[%s1180_s1 + $0x168] sm:$0xff]  ;;  %v906_v49 = vld [vmem:[%s1180_s1 + $0x120] sm:$0xff] }
  0x19   :  { %494 = vmatpush.bf16.msra.mxu3 %v896_v23  ;;  %v914_v50 = vld [vmem:[%s1180_s1 + $0x160] sm:$0xff]  ;;  %v25_v51 = vld [vmem:[%s1179_s0 + $0x18] sm:$0xf]  ;;  %v904_v55 = vld [vmem:[%s1180_s1 + $0x110] sm:$0xff] }
  0x1a   :  { %456 = vmatpush.bf16.msra.mxu0 %v871_v24  ;;  %v905_v52 = vld [vmem:[%s1180_s1 + $0x118] sm:$0xff]  ;;  %v138_v54 = vunpack.c.l.b16 %v25_v51  ;;  %v912_v56 = vld [vmem:[%s1180_s1 + $0x150] sm:$0xff]  ;;  %v903_v58 = vld [vmem:[%s1180_s1 + $0x108] sm:$0xff] }
  0x1b   :  { %469 = vmatpush.bf16.msra.mxu1 %v879_v25  ;;  %v913_v53 = vld [vmem:[%s1180_s1 + $0x158] sm:$0xff]  ;;  %v911_v59 = vld [vmem:[%s1180_s1 + $0x148] sm:$0xff]  ;;  %v24_v60 = vld [vmem:[%s1179_s0 + $0x10] sm:$0xff] }
  0x1c   :  { %482 = vmatpush.bf16.msra.mxu2 %v887_v27  ;;  %v145_v57 = vpack.c.b16 %v138_v54, %v138_v54  ;;  %v136_v61 = vunpack.c.l.b16 %v24_v60  ;;  %v137_v62 = vunpack.c.h.b16 %v24_v60  ;;  %v902_v63 = vld [vmem:[%s1180_s1 + $0x100] sm:$0xff]  ;;  %v926_v3 = vld [vmem:[%s1182_s3 + $0x38] sm:$0xff]  ;;  %v925_v4 = vld [vmem:[%s1182_s3 + $0x30] sm:$0xff] }
  0x1d   :  { %495 = vmatpush.bf16.msra.mxu3 %v895_v30  ;;  %v910_v0 = vld [vmem:[%s1180_s1 + $0x140] sm:$0xff]  ;;  %v924_v5 = vld [vmem:[%s1182_s3 + $0x28] sm:$0xff]  ;;  %v922_v7 = vld [vmem:[%s1182_s3 + $0x18] sm:$0xff] }
  0x1e   :  { %457 = vmatpush.bf16.msra.mxu0 %v870_v32  ;;  %v143_v1 = vpack.c.b16 %v136_v61, %v136_v61  ;;  %v144_v2 = vpack.c.b16 %v137_v62, %v137_v62  ;;  %v923_v6 = vld [vmem:[%s1182_s3 + $0x20] sm:$0xff]  ;;  %v921_v8 = vld [vmem:[%s1182_s3 + $0x10] sm:$0xff]  ;;  %v920_v9 = vld [vmem:[%s1182_s3 + $0x8] sm:$0xff] }
  0x1f   :  { %470 = vmatpush.bf16.msra.mxu1 %v878_v33  ;;  %v919_v12 = vld [vmem:[%s1182_s3] sm:$0xff] }
  0x20   :  { %483 = vmatpush.bf16.msra.mxu2 %v886_v36  ;;  %v928_v17 = vld [vmem:[%s1181_s2] ss:$0 sm:$0xff] }
  0x21   :  { %458 = vmatmul.bf16.vlgmr.msra.gmra.mxu0 %v139_v38  ;;  %496 = vmatpush.bf16.msra.mxu3 %v894_v41 }
  0x22   :  { %502 = vmatpush.bf16.msrb.mxu0 %v909_v34  ;;  %471 = vmatmul.bf16.vlgmr.msra.gmra.mxu1 %v140_v39 }
  0x23   :  { %515 = vmatpush.bf16.msrb.mxu1 %v917_v35  ;;  %484 = vmatmul.bf16.vlgmr.msra.gmra.mxu2 %v141_v45  ;;  %v929_v35 = vld [vmem:[%s1183_s4] ss:$0 sm:$0xff] }
  0x24   :  { %535 = vmatpush.bf16.msrb.mxu2 %v918_v42  ;;  %497 = vmatmul.bf16.vlgmr.msra.gmra.mxu3 %v142_v46 }
  0x25   :  { %611 = vmatpush.bf16.msrb.mxu3 %v926_v3 }
  0x26   :  { %503 = vmatpush.bf16.msrb.mxu0 %v908_v43 }
  0x27   :  { %516 = vmatpush.bf16.msrb.mxu1 %v916_v44 }
  0x29   :  { %612 = vmatpush.bf16.msrb.mxu3 %v925_v4 }
  0x2a   :  { %504 = vmatpush.bf16.msrb.mxu0 %v907_v47 }
  0x2b   :  { %517 = vmatpush.bf16.msrb.mxu1 %v915_v48 }
  0x2d   :  { %613 = vmatpush.bf16.msrb.mxu3 %v924_v5 }
  0x2e   :  { %505 = vmatpush.bf16.msrb.mxu0 %v906_v49 }
  0x2f   :  { %518 = vmatpush.bf16.msrb.mxu1 %v914_v50 }
  0x31   :  { %614 = vmatpush.bf16.msrb.mxu3 %v923_v6 }
  0x32   :  { %506 = vmatpush.bf16.msrb.mxu0 %v905_v52 }
  0x33   :  { %519 = vmatpush.bf16.msrb.mxu1 %v913_v53  ;;  %837 = vmatmul.msk.bf16.vlgmr.msrb.gmra.mxu2 %vm446_vm0, %v145_v57 }
  0x35   :  { %615 = vmatpush.bf16.msrb.mxu3 %v922_v7 }
  0x36   :  { %507 = vmatpush.bf16.msrb.mxu0 %v904_v55 }
  0x37   :  { %520 = vmatpush.bf16.msrb.mxu1 %v912_v56 }
  0x39   :  { %616 = vmatpush.bf16.msrb.mxu3 %v921_v8 }
  0x3a   :  { %508 = vmatpush.bf16.msrb.mxu0 %v903_v58 }
  0x3b   :  { %521 = vmatpush.bf16.msrb.mxu1 %v911_v59 }
  0x3d   :  { %617 = vmatpush.bf16.msrb.mxu3 %v920_v9 }
  0x3e   :  { %509 = vmatpush.bf16.msrb.mxu0 %v902_v63 }
  0x3f   :  { %522 = vmatpush.bf16.msrb.mxu1 %v910_v0 }
  0x41   :  { %510 = vmatmul.bf16.vlgmr.msrb.gmra.mxu0 %v143_v1  ;;  %618 = vmatpush.bf16.msrb.mxu3 %v919_v12 }
  0x42   :  { %523 = vmatmul.bf16.vlgmr.msrb.gmra.mxu1 %v144_v2 }
  0x9e   :  { %v459_v10 = vpop.f32.mrf.mxu0 }
  0x9f   :  { %v472_v11 = vpop.f32.mrf.mxu1  ;;  %v460_v18 = vadd.f32 %v928_v17, %v459_v10 }
  0xa1   :  { %v473_v21 = vadd.f32 %v472_v11, %v460_v18 }
  0xa6   :  { %v461_v13 = vpop.f32.mrf.mxu0  ;;  %v485_v15 = vpop.f32.mrf.mxu2 }
  0xa7   :  { %v474_v14 = vpop.f32.mrf.mxu1  ;;  %v498_v16 = vpop.f32.mrf.mxu3  ;;  %v486_v22 = vadd.f32 %v485_v15, %v473_v21 }
  0xa9   :  { %v499_v24 = vadd.f32 %v498_v16, %v486_v22 }
  0xae   :  { %v487_v19 = vpop.f32.mrf.mxu2 }
  0xaf   :  { %v500_v20 = vpop.f32.mrf.mxu3 }
  0xb6   :  { %v537_v23 = vpop.f32.mrf.mxu2 }
  0xbe   :  { %v511_v25 = vpop.f32.mrf.mxu0  ;;  %v539_v29 = vpop.f32.mrf.mxu2 }
  0xbf   :  { %v524_v26 = vpop.f32.mrf.mxu1  ;;  %v512_v27 = vadd.f32 %v511_v25, %v499_v24 }
  0xc1   :  { %v525_v28 = vadd.f32 %v524_v26, %v512_v27 }
  0xc3   :  { %v538_v30 = vadd.f32 %v537_v23, %v525_v28 }
  0xc5   :  { %v541_v31 = vmax.f32 %v538_v30, 0.0 }
  0xc6   :  { %v513_v32 = vpop.f32.mrf.mxu0 }
  0xc7   :  { %v526_v33 = vpop.f32.mrf.mxu1  ;;  %v542_v34 = vpack.c.bf16 %v541_v31, %v541_v31 }
  0xc9   :  { %619 = vmatmul.bf16.vlgmr.msrb.gmra.mxu3 %v542_v34 }
 0x14c   :  { %v620_v36 = vpop.f32.mrf.mxu3 }
 0x14d   :  { %v621_v37 = vadd.f32 %v929_v35, %v620_v36 }
 0x14f   :  { %624 = vst [vmem:[#allocation2] sm:$0xff] %v621_v37 }
 0x150   :  { %635 = dma.vmem_to_hbm [thread:$0]  %s631_s16, 128, %s633_s19, [#allocation3]  }
 0x154   :  { %v622_v38 = vpop.f32.mrf.mxu3 }
 0x155   :  { %954 = dma.done.wait [#allocation3], 128  }
 0x156   :  { %955 = vsyncadd [#allocation3], 4294967168 }
 0x157   :  { %640 = vsyncpa [#allocation3], 1 }

</bundles_post_ra>
